<compile_context>
chip_gen: v5e
topology: v5e:2x2
jax: 0.10.0
libtpu: 0.0.40
codegen_flags: <defaults>
</compile_context>

<pallas_src>
import jax
import jax.numpy as jnp
from jax.experimental import pallas as pl
from jax.experimental.pallas import tpu as pltpu


# ----------------------------------------------------------------------------
# Helpers
# ----------------------------------------------------------------------------
_MIN_PALLAS_ROWS = 64                 # below this, XLA's fused reduce wins
_VMEM_BUDGET_BYTES = 8 * 1024 * 1024  # per-step input working set (x2 buffers)


def _round_up(x: int, m: int) -> int:
    return ((x + m - 1) // m) * m


def _choose_rows_block(rows: int, feat: int, itemsize: int, n_inputs: int,
                       requested=None) -> int:
    """Pick a row-tile size that keeps the double-buffered inputs well under the
    scoped VMEM limit on every TPU generation (v7x has the least VMEM)."""
    if requested is None:
        per_row = max(1, n_inputs * feat * itemsize * 2)   # x2: double buffering
        blk = min(1024, _VMEM_BUDGET_BYTES // per_row)
    else:
        blk = int(requested)
    blk = max(16, (blk // 16) * 16)     # sublane-friendly for f32 and bf16
    return int(min(blk, _round_up(rows, 16)))


# ----------------------------------------------------------------------------
# Pallas kernels (row-wise KL, reduced over the last/feature axis)
# ----------------------------------------------------------------------------
def _gaussian_kl_kernel(lm_ref, ls_ref, rm_ref, rs_ref, kl_ref):
    # KL( N(lm, ls) || N(rm, rs) ), summed over the feature (lane) axis.
    lm = lm_ref[...].astype(jnp.float32)
    ls = ls_ref[...].astype(jnp.float32)
    rm = rm_ref[...].astype(jnp.float32)
    rs = rs_ref[...].astype(jnp.float32)
    inv_rs = pl.reciprocal(rs, approx=False)     # one EUP divide instead of two
    ratio = ls * inv_rs
    var_ratio = ratio * ratio
    diff = (lm - rm) * inv_rs
    kl = 0.5 * (var_ratio + diff * diff - 1.0 - jnp.log(var_ratio))
    kl_ref[...] = jnp.sum(kl, axis=-1, keepdims=True)       # (rows_blk, 1)


def _categorical_kl_kernel(lp_ref, rp_ref, kl_ref):
    # KL( Cat(lp) || Cat(rp) ), summed over the class (lane) axis.
    lp = lp_ref[...].astype(jnp.float32)
    rp = rp_ref[...].astype(jnp.float32)
    t = lp * (jnp.log(lp) - jnp.log(rp))
    # match torch's kl_divergence edge handling: q==0 -> inf, then p==0 -> 0.
    t = jnp.where(rp == 0.0, jnp.inf, t)
    t = jnp.where(lp == 0.0, 0.0, t)
    kl_ref[...] = jnp.sum(t, axis=-1, keepdims=True)         # (rows_blk, 1)


def _rowwise_kl_call(kernel, inputs, rows: int, feat: int, rows_block: int):
    grid = pl.cdiv(rows, rows_block)
    in_spec = pl.BlockSpec((rows_block, feat), lambda i: (i, 0))
    out = pl.pallas_call(
        kernel,
        out_shape=jax.ShapeDtypeStruct((rows, 1), jnp.float32),
        grid=(grid,),
        in_specs=[in_spec] * len(inputs),
        out_specs=pl.BlockSpec((rows_block, 1), lambda i: (i, 0)),
        compiler_params=pltpu.CompilerParams(
            dimension_semantics=("parallel",)),   # megacore-sharded on v7x
    )(*inputs)
    return out[:, 0]                              # (rows,)


# ----------------------------------------------------------------------------
# Pure-JAX references (also used as the tiny-shape fallback)
# ----------------------------------------------------------------------------
def _gaussian_kl_ref(lm, ls, rm, rs):
    lm, ls, rm, rs = (x.astype(jnp.float32) for x in (lm, ls, rm, rs))
    var_ratio = (ls / rs) ** 2
    t1 = ((lm - rm) / rs) ** 2
    return jnp.sum(0.5 * (var_ratio + t1 - 1.0 - jnp.log(var_ratio)), axis=-1)


def _categorical_kl_rowwise_ref(lp, rp):
    lp = lp.astype(jnp.float32)
    rp = rp.astype(jnp.float32)
    t = lp * (jnp.log(lp) - jnp.log(rp))
    t = jnp.where(rp == 0.0, jnp.inf, t)
    t = jnp.where(lp == 0.0, 0.0, t)
    return jnp.sum(t, axis=-1)                     # (B, T)


# ----------------------------------------------------------------------------
# pallas_call wrappers
# ----------------------------------------------------------------------------
def gaussian_kl(lhs_mean, lhs_std, rhs_mean, rhs_std, *, rows_block=None):
    """Per-sample Gaussian KL summed over the feature dim. Returns f32 (B, T)."""
    B, T, D = lhs_mean.shape
    rows = B * T
    if rows < _MIN_PALLAS_ROWS:
        # Too small to amortize pallas_call / grid-step overhead.
        return _gaussian_kl_ref(lhs_mean, lhs_std, rhs_mean, rhs_std)
    args = [x.reshape(rows, D) for x in (lhs_mean, lhs_std, rhs_mean, rhs_std)]
    itemsize = jnp.dtype(lhs_mean.dtype).itemsize
    blk = _choose_rows_block(rows, D, itemsize, n_inputs=4, requested=rows_block)
    kl = _rowwise_kl_call(_gaussian_kl_kernel, args, rows, D, blk)
    return kl.reshape(B, T)


def categorical_kl_rowwise(lhs_probs, rhs_probs, *, rows_block=None):
    """Categorical KL summed over the class dim. Returns f32 (B, T)."""
    B, T, K = lhs_probs.shape
    rows = B * T
    if rows < _MIN_PALLAS_ROWS:
        return _categorical_kl_rowwise_ref(lhs_probs, rhs_probs)
    args = [x.reshape(rows, K) for x in (lhs_probs, rhs_probs)]
    itemsize = jnp.dtype(lhs_probs.dtype).itemsize
    blk = _choose_rows_block(rows, K, itemsize, n_inputs=2, requested=rows_block)
    kl = _rowwise_kl_call(_categorical_kl_kernel, args, rows, K, blk)
    return kl.reshape(B, T)


# ----------------------------------------------------------------------------
# KL loss modules (mirror _AbstractKLLoss / GaussianKLLoss / CategoricalKLLoss)
# ----------------------------------------------------------------------------
class _AbstractKLLoss:
    def __init__(self, scale_factor: float, free_nats: float, balanced: bool, alpha: float):
        assert 0.0 <= alpha <= 1.0
        assert free_nats >= 0.0
        self.scale_factor = scale_factor
        self._free_nats = free_nats
        self._balanced = balanced
        self._alpha = alpha
        self.is_constraint = False

    def _compute_balanced(self, lhs_kl, rhs_kl):
        log_dict = {'kl': jax.lax.stop_gradient(jnp.mean(lhs_kl))}
        lhs = jnp.mean(jnp.maximum(lhs_kl, self._free_nats))
        rhs = jnp.mean(jnp.maximum(rhs_kl, self._free_nats))
        loss = self.scale_factor * (self._alpha * lhs + (1.0 - self._alpha) * rhs)
        return loss, log_dict

    def _return_kl(self, kl):
        log_dict = {'kl': jax.lax.stop_gradient(jnp.mean(kl))}
        loss = self.scale_factor * jnp.mean(jnp.maximum(kl, self._free_nats))
        return loss, log_dict


class GaussianKLLoss(_AbstractKLLoss):
    @staticmethod
    def kl(lhs_mean, lhs_std, rhs_mean, rhs_std):
        return gaussian_kl(lhs_mean, lhs_std, rhs_mean, rhs_std)

    def __call__(self, lhs_mean, lhs_std, rhs_mean, rhs_std):
        # Balanced-branch fusion: lhs_kl and rhs_kl are numerically identical in
        # the forward pass, so the HBM-bound KL kernel runs once (not twice).
        # TODO(synk): KL-balancing gradients (detach() on alternating sides) and
        # training through pallas_call require a jax.custom_vjp with an analytic
        # backward; this module reproduces the forward pass only.
        kl = self.kl(lhs_mean, lhs_std, rhs_mean, rhs_std)
        if self._balanced:
            return self._compute_balanced(lhs_kl=kl, rhs_kl=kl)
        return self._return_kl(kl)


class CategoricalKLLoss(_AbstractKLLoss):
    @staticmethod
    def _kl(lhs_probs, rhs_probs):
        # kl_divergence(Cat, Cat) -> (B, T) via the Pallas kernel; .sum(dim=-1)
        # over time is cheap scalar glue in JAX.
        return categorical_kl_rowwise(lhs_probs, rhs_probs).sum(axis=-1)

    def __call__(self, lhs_probs, rhs_probs):
        # Same forward-only balanced-branch fusion as GaussianKLLoss.
        kl = self._kl(lhs_probs, rhs_probs)
        if self._balanced:
            return self._compute_balanced(lhs_kl=kl, rhs_kl=kl)
        return self._return_kl(kl)


class AbstractKLObjective:
    """Holds the distribution-specific KL loss.  The abstract forward() in the
    reference raises NotImplementedError; concrete subclasses call self._kl."""

    def __init__(self, distribution: str, *args, **kwargs):
        self.distribution = distribution
        if distribution == 'gaussian':
            self._kl = GaussianKLLoss(*args, **kwargs)
        elif distribution == 'categorical':
            self._kl = CategoricalKLLoss(*args, **kwargs)
        else:
            raise NotImplementedError(
                f'KL objective for {distribution} is not implemented.')

    # TODO(synk): AbstractKLObjective.forward is abstract in the reference
    # (raises NotImplementedError); `compute` exposes the concrete KL loss.
    def compute(self, *dist_params):
        return self._kl(*dist_params)


# ----------------------------------------------------------------------------
# Demo / sanity check
# ----------------------------------------------------------------------------
if __name__ == "__main__":
    key = jax.random.PRNGKey(0)
    k1, k2, k3, k4, k5, k6 = jax.random.split(key, 6)

    B, T, D, K = 4, 64, 32, 16          # B*T = 256 rows -> real multi-step grid

    # Gaussian distribution parameters (std strictly positive via softplus)
    lhs_mean = jax.random.normal(k1, (B, T, D), dtype=jnp.float32)
    rhs_mean = jax.random.normal(k2, (B, T, D), dtype=jnp.float32)
    lhs_std = jax.nn.softplus(jax.random.normal(k3, (B, T, D), dtype=jnp.float32)) + 0.1
    rhs_std = jax.nn.softplus(jax.random.normal(k4, (B, T, D), dtype=jnp.float32)) + 0.1

    # Categorical probs via softmax over class dim
    lhs_probs = jax.nn.softmax(jax.random.normal(k5, (B, T, K), dtype=jnp.float32), axis=-1)
    rhs_probs = jax.nn.softmax(jax.random.normal(k6, (B, T, K), dtype=jnp.float32), axis=-1)

    # --- raw kernels with an explicit 64-row tile (grid of 4, pipelined) ------
    g_kl = jax.block_until_ready(
        gaussian_kl(lhs_mean, lhs_std, rhs_mean, rhs_std, rows_block=64))
    c_kl = jax.block_until_ready(
        categorical_kl_rowwise(lhs_probs, rhs_probs, rows_block=64))

    g_kl_ref = _gaussian_kl_ref(lhs_mean, lhs_std, rhs_mean, rhs_std)
    c_kl_ref = _categorical_kl_rowwise_ref(lhs_probs, rhs_probs)
    assert jnp.allclose(g_kl, g_kl_ref, rtol=1e-5, atol=1e-5)
    assert jnp.allclose(c_kl, c_kl_ref, rtol=1e-5, atol=1e-5)

    # --- full objectives (auto tile size) -------------------------------------
    gauss_obj = AbstractKLObjective(
        'gaussian', scale_factor=1.0, free_nats=1.0, balanced=True, alpha=0.8)
    g_loss, g_log = gauss_obj.compute(lhs_mean, lhs_std, rhs_mean, rhs_std)
    g_loss = jax.block_until_ready(g_loss)

    cat_obj = AbstractKLObjective(
        'categorical', scale_factor=0.5, free_nats=0.0, balanced=False, alpha=0.5)
    c_loss, c_log = cat_obj.compute(lhs_probs, rhs_probs)
    c_loss = jax.block_until_ready(c_loss)

    # Reference losses (same formulas as the torch module's forward pass)
    g_loss_ref = 1.0 * (0.8 * jnp.mean(jnp.maximum(g_kl_ref, 1.0))
                        + 0.2 * jnp.mean(jnp.maximum(g_kl_ref, 1.0)))
    c_kl_bt_ref = c_kl_ref.sum(axis=-1)                      # (B,)
    c_loss_ref = 0.5 * jnp.mean(jnp.maximum(c_kl_bt_ref, 0.0))

    assert jnp.allclose(g_loss, g_loss_ref, rtol=1e-5, atol=1e-5), (g_loss, g_loss_ref)
    assert jnp.allclose(g_log['kl'], jnp.mean(g_kl_ref), rtol=1e-5, atol=1e-5)
    assert jnp.allclose(c_loss, c_loss_ref, rtol=1e-5, atol=1e-5), (c_loss, c_loss_ref)
    assert jnp.allclose(c_log['kl'], jnp.mean(c_kl_bt_ref), rtol=1e-5, atol=1e-5)

    print("KERNEL_OK")
</pallas_src>

<mosaic_0001>
module attributes {stable_mosaic.version = 11 : i64} {
  func.func @_gaussian_kl_kernel(%arg0: i32, %arg1: memref<64x32xf32, #tpu.memory_space<vmem>>, %arg2: memref<64x32xf32, #tpu.memory_space<vmem>>, %arg3: memref<64x32xf32, #tpu.memory_space<vmem>>, %arg4: memref<64x32xf32, #tpu.memory_space<vmem>>, %arg5: memref<64x1xf32, #tpu.memory_space<vmem>>) attributes {dimension_semantics = [#tpu.dimension_semantics<parallel>], iteration_bounds = array<i64: 4>, scalar_prefetch = 0 : i64, scratch_operands = 0 : i64, tpu.core_type = #tpu.core_type<tc>, window_params = [{transform_indices = @transform_0, window_bounds = array<i64: 64, 32>}, {transform_indices = @transform_1, window_bounds = array<i64: 64, 32>}, {transform_indices = @transform_2, window_bounds = array<i64: 64, 32>}, {transform_indices = @transform_3, window_bounds = array<i64: 64, 32>}, {transform_indices = @transform_4, window_bounds = array<i64: 64, 1>}]} {
    %c0 = arith.constant 0 : index
    %c0_0 = arith.constant 0 : index
    %0 = vector.load %arg1[%c0, %c0_0] : memref<64x32xf32, #tpu.memory_space<vmem>>, vector<64x32xf32>
    %c0_1 = arith.constant 0 : index
    %c0_2 = arith.constant 0 : index
    %1 = vector.load %arg2[%c0_1, %c0_2] : memref<64x32xf32, #tpu.memory_space<vmem>>, vector<64x32xf32>
    %c0_3 = arith.constant 0 : index
    %c0_4 = arith.constant 0 : index
    %2 = vector.load %arg3[%c0_3, %c0_4] : memref<64x32xf32, #tpu.memory_space<vmem>>, vector<64x32xf32>
    %c0_5 = arith.constant 0 : index
    %c0_6 = arith.constant 0 : index
    %3 = vector.load %arg4[%c0_5, %c0_6] : memref<64x32xf32, #tpu.memory_space<vmem>>, vector<64x32xf32>
    %4 = tpu.reciprocal %3 : vector<64x32xf32> -> vector<64x32xf32>
    %5 = arith.mulf %1, %4 : vector<64x32xf32>
    %6 = arith.mulf %5, %5 : vector<64x32xf32>
    %7 = arith.subf %0, %2 : vector<64x32xf32>
    %8 = arith.mulf %7, %4 : vector<64x32xf32>
    %9 = arith.mulf %8, %8 : vector<64x32xf32>
    %10 = arith.addf %6, %9 : vector<64x32xf32>
    %cst = arith.constant 1.000000e+00 : f32
    %11 = vector.broadcast %cst : f32 to vector<64x32xf32>
    %12 = arith.subf %10, %11 : vector<64x32xf32>
    %13 = math.log %6 : vector<64x32xf32>
    %14 = arith.subf %12, %13 : vector<64x32xf32>
    %cst_7 = arith.constant 5.000000e-01 : f32
    %15 = vector.broadcast %cst_7 : f32 to vector<64x32xf32>
    %16 = arith.mulf %15, %14 : vector<64x32xf32>
    %cst_8 = arith.constant dense<0.000000e+00> : vector<64xf32>
    %17 = vector.multi_reduction <add>, %16, %cst_8 [1] : vector<64x32xf32> to vector<64xf32>
    %18 = vector.shape_cast %17 : vector<64xf32> to vector<64x1xf32>
    %c0_9 = arith.constant 0 : index
    %c0_10 = arith.constant 0 : index
    %19 = vector.load %arg5[%c0_9, %c0_10] : memref<64x1xf32, #tpu.memory_space<vmem>>, vector<64x1xf32>
    tpu.vector_store %arg5[%c0_9, %c0_10], %18 {strides = array<i32>} : memref<64x1xf32, #tpu.memory_space<vmem>>, vector<64x1xf32>,
    return
  }
  func.func @transform_0(%arg0: i32) -> (i32, i32) {
    %c0_i32 = arith.constant 0 : i32
    %c0_i32_0 = arith.constant 0 : i32
    return %arg0, %c0_i32 : i32, i32
  }
  func.func @transform_1(%arg0: i32) -> (i32, i32) {
    %c0_i32 = arith.constant 0 : i32
    %c0_i32_0 = arith.constant 0 : i32
    return %arg0, %c0_i32 : i32, i32
  }
  func.func @transform_2(%arg0: i32) -> (i32, i32) {
    %c0_i32 = arith.constant 0 : i32
    %c0_i32_0 = arith.constant 0 : i32
    return %arg0, %c0_i32 : i32, i32
  }
  func.func @transform_3(%arg0: i32) -> (i32, i32) {
    %c0_i32 = arith.constant 0 : i32
    %c0_i32_0 = arith.constant 0 : i32
    return %arg0, %c0_i32 : i32, i32
  }
  func.func @transform_4(%arg0: i32) -> (i32, i32) {
    %c0_i32 = arith.constant 0 : i32
    %c0_i32_0 = arith.constant 0 : i32
    return %arg0, %c0_i32 : i32, i32
  }
}

</mosaic_0001>

<bundles_post_ra>
// kernel: tpu_custom_call.1
= control target key start
LH: loop header
LB: loop body
LE: loop exit
PB: predicated region body
PF: predicated region fallthrough
CT: control target
= control target key end

     0   :  { %s723_s15 = smov 0   ;;  %s1089_s0 = inlined_call_operand.vmem [shape: f32[256,32], index: 0, kind: input, shape index: {}]   ;;  %s1090_s1 = inlined_call_operand.vmem [shape: f32[256,32], index: 1, kind: input, shape index: {}]   ;;  %s1091_s2 = inlined_call_operand.vmem [shape: f32[256,32], index: 2, kind: input, shape index: {}]   ;;  %s1092_s3 = inlined_call_operand.vmem [shape: f32[256,32], index: 3, kind: input, shape index: {}]   ;;  %s1093_s4 = inlined_call_operand.vmem [shape: f32[256,1], index: 4, kind: output, shape index: {}]  }
   0x1 LB: > { %s625_s16 = sadd.s32 4294967295, %s696_s15   ;;  %p629_p0 = scmp.ge.s32.totalorder %s696_s15, 1  ;;  %s696_s15 = sphi %s723_s15, %s14_s15  }
   0x2   : > { %p196_p1 = scmp.lt.s32.totalorder %s696_s15, 5 }
   0x4   : > { %p197_p2 = pnand %p629_p0, %p196_p1 }
   0x5   : > { %s630_s17 = sshll.u32 (!%p197_p2), %s625_s16, 3 }
   0x6   : > { %200 = sbr.rel (%p197_p2) target bundleno = 207 (0xcf), region = 36  ;;  %p238_p3 = scmp.lt.s32.totalorder (!%p197_p2), %s630_s17, 31 }
   0xb   : > { %s1123_s17 = smov (!%p238_p3, %s630_s17), 31 }
   0xc   : > { %s731_s18 = sshll.u32 %s1123_s17, 3 }
   0xd   : > { %s737_s21 = scalar_lea.vmem %s1089_s0, %s731_s18  ;;  %s743_s24 = scalar_lea.vmem %s1091_s2, %s731_s18 }
   0xe   : > { %s749_s27 = scalar_lea.vmem %s1092_s3, %s731_s18  ;;  %v759_v2 = vld [vmem:[%s737_s21 + $0x10] sm:$0xff]  ;;  %v771_v7 = vld [vmem:[%s737_s21] sm:$0xff]  ;;  %v804_v20 = vld [vmem:[%s737_s21 + $0x18] sm:$0xff]  ;;  %s869_s30 = scalar_lea.vmem %s1090_s1, %s731_s18 }
   0xf   : > { %v752_v0 = vld [vmem:[%s749_s27 + $0x10] sm:$0xff]  ;;  %v756_v1 = vld [vmem:[%s749_s27] sm:$0xff]  ;;  %v787_v13 = vld [vmem:[%s749_s27 + $0x18] sm:$0xff]  ;;  %s265_s7 = scalar_lea.vmem %s1093_s4, %s731_s18 }
  0x10   : > { %658 = vrcp.f32 %v752_v0  ;;  %v762_v3 = vld [vmem:[%s743_s24 + $0x10] sm:$0xff]  ;;  %v336_v4 = vand.u32 2147483647, %v752_v0  ;;  %v338_v5 = vand.u32 2147483648, %v752_v0  ;;  %v768_v6 = vld [vmem:[%s749_s27 + $0x20] sm:$0xff]  ;;  %v310_v10 = vand.u32 2147483648, %v756_v1 }
  0x11   : > { %660 = vrcp.f32 %v756_v1  ;;  %v774_v8 = vld [vmem:[%s743_s24] sm:$0xff]  ;;  %v308_v9 = vand.u32 2147483647, %v756_v1  ;;  %vm332_vm0 = vweird.f32 %v752_v0  ;;  %v429_v14 = vsub.f32 %v759_v2, %v762_v3  ;;  %v807_v21 = vld [vmem:[%s743_s24 + $0x18] sm:$0xff]  ;;  %v811_v22 = vld [vmem:[%s749_s27 + $0x8] sm:$0xff] }
  0x12   : > { %v780_v11 = vld [vmem:[%s737_s21 + $0x20] sm:$0xff]  ;;  %662 = vrcp.f32 %v768_v6  ;;  %vm304_vm1 = vweird.f32 %v756_v1  ;;  %v364_v15 = vand.u32 2147483647, %v768_v6  ;;  %v366_v16 = vand.u32 2147483648, %v768_v6  ;;  %v834_v32 = vld [vmem:[%s737_s21 + $0x8] sm:$0xff]  ;;  %v905_v59 = vld [vmem:[%s749_s27 + $0x38] sm:$0xff] }
  0x13   : > { %v783_v12 = vld [vmem:[%s743_s24 + $0x20] sm:$0xff]  ;;  %vm794_vm2 = vcmp.eq.f32.partialorder %v336_v4, 8.507059e+37  ;;  %v798_v18 = vor.u32 1.1754944e-38, %v338_v5  ;;  %v427_v19 = vsub.f32 %v771_v7, %v774_v8  ;;  %vm360_vm3 = vweird.f32 %v768_v6  ;;  %v837_v33 = vld [vmem:[%s743_s24 + $0x8] sm:$0xff]  ;;  %v277_v63 = vld [vmem:[%s869_s30 + $0x10] sm:$0xff] }
  0x14   : > { %664 = vrcp.f32 %v787_v13  ;;  %vm815_vm4 = vcmp.eq.f32.partialorder %v308_v9, 8.507059e+37  ;;  %v819_v25 = vor.u32 1.1754944e-38, %v310_v10  ;;  %v431_v26 = vsub.f32 %v780_v11, %v783_v12  ;;  %v850_v38 = vld [vmem:[%s749_s27 + $0x28] sm:$0xff]  ;;  %v275_v10 = vld [vmem:[%s869_s30] sm:$0xff] }
  0x15   : > { %v352_v27 = vand.u32 2147483648, %v787_v13  ;;  %666 = vrcp.f32 %v811_v22  ;;  %v829_v30 = vor.u32 1.1754944e-38, %v366_v16  ;;  %vm346_vm5 = vweird.f32 %v787_v13  ;;  %v876_v49 = vld [vmem:[%s737_s21 + $0x28] sm:$0xff] }
  0x16   : > { %v813_v23 = vpop.eup %658  ;;  %v350_v31 = vand.u32 2147483647, %v787_v13  ;;  %vm842_vm7 = vcmp.eq.f32.partialorder %v364_v15, 8.507059e+37  ;;  %v430_v36 = vsub.f32 %v804_v20, %v807_v21  ;;  %v322_v37 = vand.u32 2147483647, %v811_v22  ;;  %v901_v57 = vld [vmem:[%s743_s24 + $0x28] sm:$0xff] }
  0x17   : > { %v825_v28 = vpop.eup %660  ;;  %v328_v29 = vmul.f32 %v813_v23, %v752_v0  ;;  %vm333_vm6 = vweird.f32 %v813_v23  ;;  %vm318_vm9 = vweird.f32 %v811_v22  ;;  %v324_v41 = vand.u32 2147483648, %v811_v22  ;;  %v276_v61 = vld [vmem:[%s869_s30 + $0x8] sm:$0xff] }
  0x18   : > { %v300_v34 = vmul.f32 %v825_v28, %v756_v1  ;;  %v852_v39 = vpop.eup %662  ;;  %vm305_vm8 = vweird.f32 %v825_v28  ;;  %v859_v44 = vor.u32 1.1754944e-38, %v352_v27  ;;  %v428_v45 = vsub.f32 %v834_v32, %v837_v33  ;;  %vm885_vm11 = vmor %vm332_vm0, %vm333_vm6 }
  0x19   : > { %v329_v40 = vsub.f32 1.0, %v328_v29  ;;  %v356_v43 = vmul.f32 %v852_v39, %v768_v6  ;;  %vm361_vm10 = vweird.f32 %v852_v39  ;;  %v873_v48 = vor.u32 1.1754944e-38, %v324_v41  ;;  %vm912_vm14 = vmor %vm304_vm1, %vm305_vm8 }
  0x1a   : > { %v301_v42 = vsub.f32 1.0, %v300_v34  ;;  %v863_v46 = vpop.eup %664  ;;  %668 = vrcp.f32 %v850_v38  ;;  %vm892_vm12 = vcmp.eq.f32.partialorder %v350_v31, 8.507059e+37  ;;  %vm896_vm13 = vcmp.eq.f32.partialorder %v322_v37, 8.507059e+37  ;;  %vm932_vm1 = vmor %vm360_vm3, %vm361_vm10 }
  0x1b   : > { %v330_v47 = vmul.f32 %v813_v23, %v329_v40  ;;  %v879_v50 = vpop.eup %666  ;;  %v357_v53 = vsub.f32 1.0, %v356_v43  ;;  %v342_v54 = vmul.f32 %v863_v46, %v787_v13  ;;  %v378_v58 = vand.u32 2147483647, %v850_v38 }
  0x1c   : > { %v302_v52 = vmul.f32 %v825_v28, %v301_v42  ;;  %vm347_vm15 = vweird.f32 %v863_v46  ;;  %v314_v62 = vmul.f32 %v879_v50, %v811_v22  ;;  %vm319_vm0 = vweird.f32 %v879_v50 }
  0x1d   : > { %v331_v60 = vadd.f32 %v813_v23, %v330_v47  ;;  %v358_v4 = vmul.f32 %v852_v39, %v357_v53  ;;  %v343_v5 = vsub.f32 1.0, %v342_v54  ;;  %v380_v1 = vand.u32 2147483648, %v850_v38  ;;  %vm976_vm3 = vmor %vm318_vm9, %vm319_vm0 }
  0x1e   : > { %v303_v0 = vadd.f32 %v825_v28, %v302_v52  ;;  %v315_v16 = vsub.f32 1.0, %v314_v62  ;;  %v432_v27 = vsub.f32 %v876_v49, %v901_v57  ;;  %670 = vrcp.f32 %v905_v59  ;;  %v278_v52 = vld [vmem:[%s869_s30 + $0x18] sm:$0xff] }
  0x1f   : > { %v335_v9 = vsel %vm885_vm11, %v813_v23, %v331_v60  ;;  %v359_v6 = vadd.f32 %v852_v39, %v358_v4  ;;  %v344_v31 = vmul.f32 %v863_v46, %v343_v5  ;;  %vm499_vm6 = vcmask 261120  }
  0x20   : > { %v340_v29 = vsel %vm794_vm2, %v798_v18, %v335_v9  ;;  %v307_v23 = vsel %vm912_vm14, %v825_v28, %v303_v0  ;;  %v947_v34 = vpop.eup %668  ;;  %v279_v18 = vld [vmem:[%s869_s30 + $0x20] sm:$0xff]  ;;  %vm960_vm2 = vmor %vm346_vm5, %vm347_vm15  ;;  %v316_v41 = vmul.f32 %v879_v50, %v315_v16  ;;  %vm998_vm5 = vcmp.eq.f32.partialorder %v378_v58, 8.507059e+37 }
  0x21   : > { %v413_v37 = vmul.f32 %v340_v29, %v277_v63  ;;  %v437_v40 = vmul.f32 %v429_v14, %v340_v29  ;;  %v312_v17 = vsel %vm815_vm4, %v819_v25, %v307_v23  ;;  %v363_v3 = vsel %vm932_vm1, %v852_v39, %v359_v6 }
  0x22   : > { %v411_v42 = vmul.f32 %v312_v17, %v275_v10  ;;  %v435_v2 = vmul.f32 %v427_v19, %v312_v17  ;;  %v345_v14 = vadd.f32 %v863_v46, %v344_v31  ;;  %vm374_vm4 = vweird.f32 %v850_v38 }
  0x23   : > { %v421_v24 = vmul.f32 %v413_v37, %v413_v37  ;;  %v445_v7 = vmul.f32 %v437_v40, %v437_v40  ;;  %v368_v8 = vsel %vm842_vm7, %v829_v30, %v363_v3  ;;  %v317_v19 = vadd.f32 %v879_v50, %v316_v41  ;;  %v280_v41 = vld [vmem:[%s869_s30 + $0x28] sm:$0xff] }
  0x24   : > { %v419_v25 = vmul.f32 %v411_v42, %v411_v42  ;;  %v443_v39 = vmul.f32 %v435_v2, %v435_v2  ;;  %v415_v43 = vmul.f32 %v368_v8, %v279_v18  ;;  %v439_v22 = vmul.f32 %v431_v26, %v368_v8  ;;  %v988_v47 = vpop.eup %670 }
  0x25   : > { %v453_v51 = vadd.f32 %v445_v7, %v421_v24  ;;  %672 = vlog2.f32 %v421_v24  ;;  %v349_v35 = vsel %vm960_vm2, %v863_v46, %v345_v14  ;;  %v321_v30 = vsel %vm976_vm3, %v879_v50, %v317_v19 }
  0x26   : > { %v451_v53 = vadd.f32 %v443_v39, %v419_v25  ;;  %674 = vlog2.f32 %v419_v25  ;;  %v423_v54 = vmul.f32 %v415_v43, %v415_v43  ;;  %v447_v60 = vmul.f32 %v439_v22, %v439_v22  ;;  %v274_v43 = vld [vmem:[%s737_s21 + $0x38] sm:$0xff] }
  0x27   : > { %v642_v12 = vadd.f32 -1.0, %v453_v51  ;;  %v354_v26 = vsel %vm892_vm12, %v859_v44, %v349_v35  ;;  %v326_v46 = vsel %vm896_vm13, %v873_v48, %v321_v30  ;;  %v370_v50 = vmul.f32 %v947_v34, %v850_v38  ;;  %v290_v22 = vld [vmem:[%s743_s24 + $0x38] sm:$0xff] }
  0x28   : > { %v640_v62 = vadd.f32 -1.0, %v451_v53  ;;  %v455_v63 = vadd.f32 %v447_v60, %v423_v54  ;;  %676 = vlog2.f32 %v423_v54  ;;  %v414_v58 = vmul.f32 %v354_v26, %v278_v52  ;;  %v297_v60 = vld [vmem:[%s749_s27 + $0x30] sm:$0xff] }
  0x29   : > { %v438_v0 = vmul.f32 %v430_v36, %v354_v26  ;;  %v412_v4 = vmul.f32 %v326_v46, %v276_v61  ;;  %v436_v44 = vmul.f32 %v428_v45, %v326_v46  ;;  %v371_v55 = vsub.f32 1.0, %v370_v50  ;;  %v273_v45 = vld [vmem:[%s737_s21 + $0x30] sm:$0xff] }
  0x2a   : > { %v644_v5 = vadd.f32 -1.0, %v455_v63  ;;  %v422_v56 = vmul.f32 %v414_v58, %v414_v58  ;;  %vm375_vm7 = vweird.f32 %v947_v34  ;;  %v381_v48 = vor.u32 1.1754944e-38, %v380_v1 }
  0x2b   : > { %v673_v9 = vpop.eup %672  ;;  %v446_v10 = vmul.f32 %v438_v0, %v438_v0  ;;  %v420_v15 = vmul.f32 %v412_v4, %v412_v4  ;;  %v444_v16 = vmul.f32 %v436_v44, %v436_v44  ;;  %v372_v29 = vmul.f32 %v947_v34, %v371_v55  ;;  %vm1025_vm9 = vmor %vm374_vm4, %vm375_vm7 }
  0x2c   : > { %v675_v23 = vpop.eup %674  ;;  %v472_v20 = vmul.f32 0.6931472, %v673_v9  ;;  %678 = vlog2.f32 %v422_v56  ;;  %v398_v21 = vmul.f32 %v988_v47, %v905_v59  ;;  %vm402_vm8 = vweird.f32 %v905_v59 }
  0x2d   : > { %v468_v32 = vmul.f32 0.6931472, %v675_v23  ;;  %v454_v33 = vadd.f32 %v446_v10, %v422_v56  ;;  %v452_v36 = vadd.f32 %v444_v16, %v420_v15  ;;  %680 = vlog2.f32 %v420_v15 }
  0x2e   : > { %v677_v1 = vpop.eup %676  ;;  %v485_v6 = vsub.f32 %v642_v12, %v472_v20  ;;  %v373_v31 = vadd.f32 %v947_v34, %v372_v29  ;;  %v399_v37 = vsub.f32 1.0, %v398_v21  ;;  %vm403_vm10 = vweird.f32 %v988_v47  ;;  %v282_v12 = vld [vmem:[%s869_s30 + $0x38] sm:$0xff] }
  0x2f   : > { %v483_v40 = vsub.f32 %v640_v62, %v468_v32  ;;  %v476_v17 = vmul.f32 0.6931472, %v677_v1  ;;  %v643_v18 = vadd.f32 -1.0, %v454_v33  ;;  %v641_v28 = vadd.f32 -1.0, %v452_v36  ;;  %vm1041_vm11 = vmor %vm402_vm8, %vm403_vm10  ;;  %v289_v1 = vld [vmem:[%s743_s24 + $0x30] sm:$0xff] }
  0x30   : > { %v493_v42 = vmul.f32 0.5, %v485_v6  ;;  %v377_v38 = vsel %vm1025_vm9, %v947_v34, %v373_v31  ;;  %v400_v2 = vmul.f32 %v988_v47, %v399_v37  ;;  %v406_v3 = vand.u32 2147483647, %v905_v59 }
  0x31   : > { %v491_v14 = vmul.f32 0.5, %v483_v40  ;;  %v487_v13 = vsub.f32 %v644_v5, %v476_v17  ;;  %v382_v24 = vsel %vm998_vm5, %v381_v48, %v377_v38  ;;  %v408_v8 = vand.u32 2147483648, %v905_v59 }
  0x32   : > { %v679_v19 = vpop.eup %678  ;;  %v506_v34 = vsel %vm499_vm6, %v493_v42, 0.0  ;;  %v416_v25 = vmul.f32 %v382_v24, %v280_v41  ;;  %v440_v39 = vmul.f32 %v432_v27, %v382_v24  ;;  %v401_v51 = vadd.f32 %v988_v47, %v400_v2  ;;  %v281_v42 = vld [vmem:[%s869_s30 + $0x30] sm:$0xff] }
  0x33   : > { %v681_v52 = vpop.eup %680  ;;  %507 = vadd.xlane.f32.xlu1 %v506_v34  ;;  %v500_v35 = vsel %vm499_vm6, %v491_v14, 0.0  ;;  %v495_v30 = vmul.f32 0.5, %v487_v13  ;;  %v474_v59 = vmul.f32 0.6931472, %v679_v19  ;;  %vm1054_vm12 = vcmp.eq.f32.partialorder %v406_v3, 8.507059e+37 }
  0x34   : > { %501 = vadd.xlane.f32.xlu0 %v500_v35  ;;  %v470_v54 = vmul.f32 0.6931472, %v681_v52  ;;  %v424_v49 = vmul.f32 %v416_v25, %v416_v25  ;;  %v448_v57 = vmul.f32 %v440_v39, %v440_v39  ;;  %v405_v27 = vsel %vm1041_vm11, %v988_v47, %v401_v51 }
  0x35   : > { %v512_v61 = vsel %vm499_vm6, %v495_v30, 0.0  ;;  %v486_v11 = vsub.f32 %v643_v18, %v474_v59  ;;  %v409_v26 = vor.u32 1.1754944e-38, %v408_v8  ;;  %v434_v46 = vsub.f32 %v274_v43, %v290_v22 }
  0x36   : > { %513 = vadd.xlane.f32.xlu2 %v512_v61  ;;  %v484_v50 = vsub.f32 %v641_v28, %v470_v54  ;;  %682 = vlog2.f32 %v424_v49  ;;  %v456_v63 = vadd.f32 %v448_v57, %v424_v49  ;;  %v394_v20 = vand.u32 2147483648, %v297_v60 }
  0x37   : > { %v494_v62 = vmul.f32 0.5, %v486_v11  ;;  %v410_v58 = vsel %vm1054_vm12, %v409_v26, %v405_v27  ;;  %684 = vrcp.f32 %v297_v60  ;;  %vm388_vm13 = vweird.f32 %v297_v60 }
  0x38   : > { %v492_v0 = vmul.f32 0.5, %v484_v50  ;;  %v418_v4 = vmul.f32 %v410_v58, %v282_v12  ;;  %v442_v44 = vmul.f32 %v434_v46, %v410_v58  ;;  %v645_v48 = vadd.f32 -1.0, %v456_v63 }
  0x39   : > { %v509_v47 = vsel %vm499_vm6, %v494_v62, 0.0  ;;  %v392_v32 = vand.u32 2147483647, %v297_v60  ;;  %v395_v17 = vor.u32 1.1754944e-38, %v394_v20  ;;  %v433_v28 = vsub.f32 %v273_v45, %v289_v1 }
  0x3a   : > { %v503_v55 = vsel %vm499_vm6, %v492_v0, 0.0  ;;  %v426_v5 = vmul.f32 %v418_v4, %v418_v4  ;;  %v450_v56 = vmul.f32 %v442_v44, %v442_v44  ;;  %vm524_vm1 = vcmask 7168  }
  0x3b   : > { %510 = vadd.xlane.f32.xlu1 %v509_v47  ;;  %vm393_vm0 = vcmp.eq.f32.partialorder %v392_v32, 8.507059e+37 }
  0x3c   : > { %v683_v9 = vpop.eup %682  ;;  %504 = vadd.xlane.f32.xlu0 %v503_v55  ;;  %686 = vlog2.f32 %v426_v5  ;;  %v458_v16 = vadd.f32 %v450_v56, %v426_v5 }
  0x3d   : > { %v685_v10 = vpop.eup %684  ;;  %v478_v15 = vmul.f32 0.6931472, %v683_v9 }
  0x3e   : > { %v384_v29 = vmul.f32 %v685_v10, %v297_v60  ;;  %vm389_vm14 = vweird.f32 %v685_v10  ;;  %v647_v36 = vadd.f32 -1.0, %v458_v16 }
  0x3f   : > { %v488_v23 = vsub.f32 %v645_v48, %v478_v15  ;;  %vm390_vm15 = vmor %vm388_vm13, %vm389_vm14 }
  0x40   : > { %v385_v21 = vsub.f32 1.0, %v384_v29 }
  0x41   : > { %v496_v33 = vmul.f32 0.5, %v488_v23 }
  0x42   : > { %v687_v6 = vpop.eup %686  ;;  %v386_v31 = vmul.f32 %v685_v10, %v385_v21 }
  0x43   : > { %v515_v37 = vsel %vm499_vm6, %v496_v33, 0.0  ;;  %v482_v40 = vmul.f32 0.6931472, %v687_v6 }
  0x44   : > { %516 = vadd.xlane.f32.xlu2 %v515_v37  ;;  %v387_v18 = vadd.f32 %v685_v10, %v386_v31 }
  0x45   : > { %v490_v41 = vsub.f32 %v647_v36, %v482_v40 }
  0x46   : > { %v391_v38 = vsel %vm390_vm15, %v685_v10, %v387_v18 }
  0x47   : > { %v498_v2 = vmul.f32 0.5, %v490_v41  ;;  %v396_v3 = vsel %vm393_vm0, %v395_v17, %v391_v38 }
  0x48   : > { %v417_v14 = vmul.f32 %v396_v3, %v281_v42  ;;  %v441_v13 = vmul.f32 %v433_v28, %v396_v3 }
  0x49   : > { %v521_v24 = vsel %vm499_vm6, %v498_v2, 0.0 }
  0x4a   : > { %522 = vadd.xlane.f32.xlu1 %v521_v24  ;;  %v425_v7 = vmul.f32 %v417_v14, %v417_v14  ;;  %v449_v8 = vmul.f32 %v441_v13, %v441_v13 }
  0x4c   : > { %688 = vlog2.f32 %v425_v7  ;;  %v457_v19 = vadd.f32 %v449_v8, %v425_v7 }
  0x4e   : > { %v646_v34 = vadd.f32 -1.0, %v457_v19 }
  0x52   : > { %v689_v25 = vpop.eup %688 }
  0x53   : > { %v480_v39 = vmul.f32 0.6931472, %v689_v25 }
  0x55   : > { %v489_v43 = vsub.f32 %v646_v34, %v480_v39 }
  0x57   : > { %v497_v22 = vmul.f32 0.5, %v489_v43 }
  0x59   : > { %v518_v51 = vsel %vm499_vm6, %v497_v22, 0.0 }
  0x5a   : > { %519 = vadd.xlane.f32.xlu0 %v518_v51 }
  0xa6   : > { %v508_v52 = vpop.xlane.xlu1 %507 }
  0xa7   : > { %527 = vst.msk [vmem:[%s265_s7 + $0x10] sm:$0xff] %vm524_vm1, %v508_v52  ;;  %v502_v35 = vpop.xlane.xlu0 %501 }
  0xa8   : > { %525 = vst.msk [vmem:[%s265_s7] sm:$0xff] %vm524_vm1, %v502_v35 }
  0xa9   : > { %v514_v30 = vpop.xlane.xlu2 %513 }
  0xaa   : > { %529 = vst.msk [vmem:[%s265_s7 + $0x20] sm:$0xff] %vm524_vm1, %v514_v30 }
  0xae   : > { %v511_v59 = vpop.xlane.xlu1 %510 }
  0xaf   : > { %528 = vst.msk [vmem:[%s265_s7 + $0x18] sm:$0xff] %vm524_vm1, %v511_v59  ;;  %v505_v53 = vpop.xlane.xlu0 %504 }
  0xb0   : > { %526 = vst.msk [vmem:[%s265_s7 + $0x8] sm:$0xff] %vm524_vm1, %v505_v53 }
  0xb7   : > { %v517_v54 = vpop.xlane.xlu2 %516 }
  0xb8   : > { %530 = vst.msk [vmem:[%s265_s7 + $0x28] sm:$0xff] %vm524_vm1, %v517_v54 }
  0xbd   : > { %v523_v49 = vpop.xlane.xlu1 %522 }
  0xbe   : > { %532 = vst.msk [vmem:[%s265_s7 + $0x38] sm:$0xff] %vm524_vm1, %v523_v49 }
  0xcd   : > { %v520_v57 = vpop.xlane.xlu0 %519 }
  0xce   : > { %531 = vst.msk [vmem:[%s265_s7 + $0x30] sm:$0xff] %vm524_vm1, %v520_v57 }
  0xcf PF: > { %s14_s15 = sadd.s32 1, %s696_s15  }
  0xd0   : > { %p11_p4 = scmp.ge.s32.totalorder %s14_s15, 6  }
  0xd2   :  { %13 = sbr.rel (!%p11_p4) target bundleno = 1 (0x1), region = 75 }

</bundles_post_ra>
